<compile_context>
chip_gen: v5e
topology: v5e:2x2
jax: 0.10.0
libtpu: 0.0.40
codegen_flags: <defaults>
</compile_context>

<pallas_src>
import jax
import jax.numpy as jnp
from jax.experimental import pallas as pl
from jax.experimental.pallas import tpu as pltpu


def scale_layer_kernel(scale_ref, x_ref, out_ref):
    """out = exp(scale) * x for one (block_b, W) batch tile.

    scale_ref: (1, W) f32 log-scale parameter (VMEM-resident across steps).
    x_ref / out_ref: (block_b, W) batch tile in the I/O dtype.
    Math is done in f32; downcast happens only on the store.
    """
    x = x_ref[...].astype(jnp.float32)
    out_ref[...] = (jnp.exp(scale_ref[...]) * x).astype(out_ref.dtype)


def _sublane_multiple(dtype):
    """Minimum sublane granularity for the second-to-last block dim."""
    d = jnp.dtype(dtype)
    if d.itemsize == 2:   # bf16 / fp16
        return 16
    if d.itemsize == 1:   # fp8 / int8
        return 32
    return 8              # f32


def _choose_block_b(B, sublane, target=2048):
    """Pick a batch tile: as large as practical, >= 2 grid steps when possible."""
    if B <= sublane:
        return B                                  # single full-extent tile
    blk = min(target, B)
    blk = (blk // sublane) * sublane
    if blk >= B:
        # B fits in one target-sized tile: split so v7x's 2 TCs both get work.
        blk = max(sublane, ((B // 2) // sublane) * sublane)
    return max(blk, sublane)


def scale_layer(x, scale, *, block_b=None):
    """Apply ScaleLayer: exp(scale) * x, scale broadcast over the batch axis."""
    B, W = x.shape
    assert scale.shape == (W,)

    sublane = _sublane_multiple(x.dtype)
    if block_b is None:
        block_b = _choose_block_b(B, sublane)
    block_b = min(block_b, B)
    if block_b < B:
        # (sublane, 128) block-shape constraint applies when the block is not
        # the full array extent.
        block_b = max(sublane, (block_b // sublane) * sublane)

    # scale parameter stays f32 (tiny); exp + multiply run in f32 in-kernel.
    scale2 = scale.astype(jnp.float32).reshape(1, W)

    # Partial last tile (B % block_b != 0) is fine for an elementwise op:
    # out-of-range rows are read as garbage but their writes are clipped.
    grid = (pl.cdiv(B, block_b),)

    return pl.pallas_call(
        scale_layer_kernel,
        out_shape=jax.ShapeDtypeStruct((B, W), x.dtype),
        grid_spec=pl.GridSpec(
            grid=grid,
            in_specs=[
                # per-channel log-scale: same block every step -> VMEM-resident
                pl.BlockSpec((1, W), lambda i: (0, 0)),
                # batch tile of the input
                pl.BlockSpec((block_b, W), lambda i: (i, 0)),
            ],
            out_specs=pl.BlockSpec((block_b, W), lambda i: (i, 0)),
        ),
        compiler_params=pltpu.CompilerParams(
            dimension_semantics=("parallel",)),
    )(scale2, x)


if __name__ == "__main__":
    # module hyper-params: width=128, scale_init=0.5 ; x is (batch, width)
    B, W = 16, 128
    SCALE_INIT = 0.5

    key = jax.random.PRNGKey(0)
    k1, k2 = jax.random.split(key)

    x = jax.random.normal(k1, (B, W), jnp.float32)
    # parameter = log(scale_init) at init; perturb slightly so the
    # broadcast/exp path is exercised with non-constant values.
    scale = (jnp.log(SCALE_INIT)
             + 0.1 * jax.random.normal(k2, (W,), jnp.float32))

    # f32 path (auto tile choice -> 2 grid steps of 8 rows at this tiny B)
    out = scale_layer(x, scale)
    out = jax.block_until_ready(out)
    ref = jnp.exp(scale)[None, :] * x
    assert out.shape == (B, W)
    assert jnp.allclose(out, ref, atol=1e-6, rtol=1e-6), \
        float(jnp.abs(out - ref).max())

    # bf16 I/O path (f32 math in-kernel, downcast only on the store)
    x_bf16 = x.astype(jnp.bfloat16)
    out_bf16 = jax.block_until_ready(scale_layer(x_bf16, scale))
    ref_bf16 = (jnp.exp(scale)[None, :]
                * x_bf16.astype(jnp.float32)).astype(jnp.bfloat16)
    assert out_bf16.dtype == jnp.bfloat16
    assert jnp.allclose(out_bf16.astype(jnp.float32),
                        ref_bf16.astype(jnp.float32),
                        atol=1e-2, rtol=1e-2)

    print("KERNEL_OK")
</pallas_src>

<mosaic_0001>
module attributes {stable_mosaic.version = 11 : i64} {
  func.func @scale_layer_kernel(%arg0: i32, %arg1: memref<1x128xf32, #tpu.memory_space<vmem>>, %arg2: memref<8x128xf32, #tpu.memory_space<vmem>>, %arg3: memref<8x128xf32, #tpu.memory_space<vmem>>) attributes {dimension_semantics = [#tpu.dimension_semantics<parallel>], iteration_bounds = array<i64: 2>, scalar_prefetch = 0 : i64, scratch_operands = 0 : i64, tpu.core_type = #tpu.core_type<tc>, window_params = [{pipeline_mode = #tpu.pipeline_mode<synchronous>, transform_indices = @transform_0, window_bounds = array<i64: 1, 128>}, {transform_indices = @transform_1, window_bounds = array<i64: 8, 128>}, {transform_indices = @transform_2, window_bounds = array<i64: 8, 128>}]} {
    %c0 = arith.constant 0 : index
    %c0_0 = arith.constant 0 : index
    %0 = vector.load %arg2[%c0, %c0_0] : memref<8x128xf32, #tpu.memory_space<vmem>>, vector<8x128xf32>
    %c0_1 = arith.constant 0 : index
    %c0_2 = arith.constant 0 : index
    %1 = vector.load %arg1[%c0_1, %c0_2] : memref<1x128xf32, #tpu.memory_space<vmem>>, vector<1x128xf32>
    %2 = math.exp %1 : vector<1x128xf32>
    %3 = vector.broadcast %2 : vector<1x128xf32> to vector<8x128xf32>
    %4 = arith.mulf %3, %0 : vector<8x128xf32>
    %c0_3 = arith.constant 0 : index
    %c0_4 = arith.constant 0 : index
    %5 = vector.load %arg3[%c0_3, %c0_4] : memref<8x128xf32, #tpu.memory_space<vmem>>, vector<8x128xf32>
    tpu.vector_store %arg3[%c0_3, %c0_4], %4 {strides = array<i32>} : memref<8x128xf32, #tpu.memory_space<vmem>>, vector<8x128xf32>,
    return
  }
  func.func @transform_0(%arg0: i32) -> (i32, i32) {
    %c0_i32 = arith.constant 0 : i32
    %c0_i32_0 = arith.constant 0 : i32
    %c0_i32_1 = arith.constant 0 : i32
    return %c0_i32, %c0_i32_0 : i32, i32
  }
  func.func @transform_1(%arg0: i32) -> (i32, i32) {
    %c0_i32 = arith.constant 0 : i32
    %c0_i32_0 = arith.constant 0 : i32
    return %arg0, %c0_i32 : i32, i32
  }
  func.func @transform_2(%arg0: i32) -> (i32, i32) {
    %c0_i32 = arith.constant 0 : i32
    %c0_i32_0 = arith.constant 0 : i32
    return %arg0, %c0_i32 : i32, i32
  }
}

</mosaic_0001>

<bundles_post_ra>
// kernel: tpu_custom_call.1
= control target key start
LH: loop header
LB: loop body
LE: loop exit
PB: predicated region body
PF: predicated region fallthrough
CT: control target
= control target key end

     0   :  { %7 = vsyncpa [#allocation3], 0  ;;  %s642_s0 = inlined_call_operand.hbm [shape: f32[1,128], index: 0, kind: input, shape index: {}]   ;;  %s643_s1 = inlined_call_operand.hbm [shape: f32[16,128], index: 1, kind: input, shape index: {}]   ;;  %s644_s2 = inlined_call_operand.hbm [shape: f32[16,128], index: 2, kind: output, shape index: {}]  }
   0x1   :  { %8 = vsyncpa [#allocation6], 0 }
   0x2   :  { %10 = vsyncpa [#allocation6 + $0x1], 0 }
   0x3   :  { %11 = vsyncpa [#allocation4], 0 }
   0x4   :  { %13 = vsyncpa [#allocation4 + $0x1], 0  ;;  %s504_s9 = smov 0   ;;  %s506_s10 = smov 0  }
   0x5   :  { %s508_s11 = smov 0   ;;  %s510_s12 = smov 0  }
   0x6 LB: > { %s525_s13 = sadd.s32 4294967295, %s486_s12   ;;  %s283_s14 = sadd.s32 4294967294, %s486_s12   ;;  %s486_s12 = sphi %s510_s12, %s654_s12   ;;  %s482_s11 = sphi %s508_s11, %s653_s11   ;;  %s478_s10 = sphi %s506_s10, %s652_s10   ;;  %s474_s9 = sphi %s504_s9, %s651_s9  }
   0x7   : > { %p60_p0 = scmp.ne.s32.totalorder %s478_s10, %s474_s9  ;;  %p61_p1 = scmp.eq.s32.totalorder %s525_s13, 0 }
   0x8   : > { %p84_p2 = scmp.eq.s32.totalorder %s525_s13, 1  ;;  %p90_p3 = scmp.eq.s32.totalorder %s283_s14, 1 }
   0x9   : > { %p534_p4 = por %p61_p1, %p60_p0  ;;  %p284_p5 = scmp.ge.s32.totalorder %s486_s12, 1 }
   0xa   : > { %p539_p6 = por %p90_p3, %p60_p0  ;;  %p97_p7 = scmp.lt.s32.totalorder %s486_s12, 3 }
   0xb   : > { %s109_s19 = sshll.u32 %s642_s0, 4  ;;  %s488_s21 = smov [#allocation2]   ;;  %s110_s19 = int_to_ptr.hbm [resolvable:$true] %s109_s19 }
   0xc   : > { %p547_p8 = pnand %p284_p5, %p97_p7  ;;  %s111_s22 = sshll.u32 %s488_s21, 4  ;;  %s112_s22 = int_to_ptr.vmem [resolvable:$true] %s111_s22 }
   0xd   : > { %s557_s23 = sadd.s32 1, %s486_s12   ;;  %s47_s24 = sadd.s32 1, %s482_s11 }
   0xe   : > { %p305_p10 = pneg %p547_p8  ;;  %s44_s25 = ssub.s32 %s486_s12, %s557_s23 }
   0xf   : > { %p45_p12 = scmp.eq.s32.totalorder %s44_s25, 0  ;;  %p54_p13 = scmp.ne.s32.totalorder %s482_s11, %s478_s10 }
  0x10   : > { %p306_p11 = pnand %p305_p10, %p61_p1  ;;  %p55_p0 = scmp.eq.s32.totalorder %s486_s12, 0 }
  0x11   : > { %s566_s26 = scalar_select %p45_p12, %s482_s11, %s47_s24  }
  0x12   : > { %308 = dma.hbm_to_vmem [thread:$0]  (!%p306_p11), %s110_s19, 16, %s112_s22, [#allocation3]  }
  0x13   : > { %p570_p3 = por %p84_p2, %p54_p13  ;;  %p318_p5 = scmp.lt.s32.totalorder %s486_s12, 2 }
  0x14   : > { %s122_s28 = sand.u32 1, %s482_s11   ;;  %s288_s29 = sshll.u32 %s486_s12, 3 }
  0x15   : > { %p56_p7 = por %p55_p0, %p54_p13  ;;  %s287_s30 = sshll.u32 %s122_s28, 3 }
  0x16   : > { %s130_s5 = scalar_lea.hbm %s643_s1, %s288_s29  ;;  %s126_s7 = scalar_lea.vmem [#allocation5], %s287_s30 }
  0x17   : > { %s132_s6 = sshll.u32 %s130_s5, 4  ;;  %s134_s8 = sshll.u32 %s126_s7, 4  ;;  %s133_s6 = int_to_ptr.hbm [resolvable:$true] %s132_s6  ;;  %s135_s8 = int_to_ptr.vmem [resolvable:$true] %s134_s8 }
  0x18   : > { %p580_p10 = pnand %p318_p5, %p56_p7  ;;  %s123_s17 = scalar_lea.sflag [#allocation6], %s122_s28 }
  0x19   : > { %s386_s18 = sshra.s32 %s133_s6, 4  ;;  %s393_s24 = scalar_lea.hbm %s643_s1, 16  ;;  %s387_s18 = int_to_ptr.hbm [resolvable:$true] %s386_s18 }
  0x1a   : > { %s388_s19 = scalar_lea.hbm %s387_s18, 8  ;;  %p390_p11 = pneg %p580_p10 }
  0x1b   : > { %p389_p2 = scmp.ne.s32.totalorder %s387_s18, %s388_s19  ;;  %p394_p0 = scmp.lt.s32.totalorder %s387_s18, %s643_s1 }
  0x1c   : > { %p395_p5 = scmp.lt.s32.totalorder %s393_s24, %s388_s19 }
  0x1d   : > { %p391_p12 = pnand %p390_p11, %p389_p2 }
  0x1e   : > { %p396_p7 = por %p395_p5, %p394_p0 }
  0x1f   : > { %p392_p13 = pneg %p391_p12 }
  0x21   : > { %p397_p9 = pnand %p396_p7, %p392_p13 }
  0x23   : > { %400 = shalt.err (!%p397_p9)
}
  0x24   : > { %312 = dma.hbm_to_vmem [thread:$0]  (!%p580_p10), %s133_s6, 128, %s135_s8, %s123_s17  }
  0x25   : > { %143 = sbr.rel (%p547_p8) target bundleno = 64 (0x40), region = 28 }
  0x2a   : > { %461 = dma.done.wait (%p61_p1), [#allocation3], 16  }
  0x2b   : > { %463 = vsyncadd (%p61_p1), [#allocation3], 4294967280  ;;  %s601_s28 = sand.u32 1, %s478_s10  }
  0x2c   : > { %s291_s30 = sshll.u32 %s601_s28, 3  ;;  %s151_s3 = scalar_lea.sflag [#allocation6], %s601_s28 }
  0x2d   : > { %s154_s4 = scalar_lea.vmem [#allocation5], %s291_s30 }
  0x2e   : > { %465 = dma.done.wait (%p534_p4), %s151_s3, 128  }
  0x2f   : > { %467 = vsyncadd (%p534_p4), %s151_s3, 4294967168  ;;  %v177_v0 = vld [vmem:[#allocation2] sm:$0x1]  ;;  %s294_s20 = sshll.u32 %s525_s13, 3  ;;  %v176_v3 = vld [vmem:[%s154_s4] sm:$0xff]  ;;  %s175_s8 = scalar_lea.vmem [#allocation7], %s291_s30 }
  0x30   : > { %v178_v1 = vmul.f32 1.442695, %v177_v0  ;;  %s196_s7 = scalar_lea.hbm %s644_s2, %s294_s20  ;;  %s198_s14 = sshll.u32 %s175_s8, 4  ;;  %s199_s14 = int_to_ptr.vmem [resolvable:$true] %s198_s14 }
  0x31   : > { %s200_s17 = sshll.u32 %s196_s7, 4  ;;  %s186_s15 = scalar_lea.sflag [#allocation4], %s601_s28  ;;  %s201_s17 = int_to_ptr.hbm [resolvable:$true] %s200_s17 }
  0x32   : > { %354 = vpow2.f32 %v178_v1  ;;  %s430_s18 = sshra.s32 %s201_s17, 4  ;;  %s436_s22 = scalar_lea.hbm %s644_s2, 16  ;;  %s431_s18 = int_to_ptr.hbm [resolvable:$true] %s430_s18 }
  0x33   : > { %s432_s19 = scalar_lea.hbm %s431_s18, 8  ;;  %p437_p9 = scmp.lt.s32.totalorder %s431_s18, %s644_s2 }
  0x34   : > { %p433_p1 = scmp.ne.s32.totalorder %s431_s18, %s432_s19  ;;  %p438_p10 = scmp.lt.s32.totalorder %s436_s22, %s432_s19 }
  0x36   : > { %p434_p4 = pnand %p433_p1, %p570_p3  ;;  %p439_p2 = por %p438_p10, %p437_p9 }
  0x38   : > { %v355_v2 = vpop.eup %354  ;;  %p435_p8 = pneg %p434_p4 }
  0x39   : > { %v181_v4 = vperm.slane %v355_v2, 0 }
  0x3a   : > { %p440_p11 = pnand %p439_p2, %p435_p8 }
  0x3b   : > { %v183_v5 = vmul.f32 %v181_v4, %v176_v3 }
  0x3d   : > { %184 = vst [vmem:[%s175_s8] sm:$0xff] %v183_v5 }
  0x3e   : > { %443 = shalt.err (!%p440_p11)
}
  0x3f   : > { %303 = dma.vmem_to_hbm [thread:$0]  (%p570_p3), %s199_s14, 128, %s201_s17, %s186_s15  }
  0x40 PF: > { %s212_s29 = sand.u32 1, %s474_s9   ;;  %p650_p12 = scmp.ge.s32.totalorder %s486_s12, 2 }
  0x41   : > { %s213_s28 = scalar_lea.sflag [#allocation4], %s212_s29 }
  0x42   : > { %p314_p13 = pnand %p650_p12, %p539_p6 }
  0x44   : > { %p315_p0 = pneg %p314_p13 }
  0x46   : > { %469 = dma.done.wait (%p315_p0), %s213_s28, 128  }
  0x47   : > { %471 = vsyncadd (%p315_p0), %s213_s28, 4294967168  ;;  %p16_p5 = scmp.ge.s32.totalorder %s557_s23, 4   ;;  %s651_s9 = smov %s478_s10 }
  0x48   : > { %s652_s10 = smov %s482_s11  ;;  %s653_s11 = smov %s566_s26 }
  0x49   : > { %s654_s12 = smov %s557_s23  ;;  %18 = sbr.rel (!%p16_p5) target bundleno = 6 (0x6), region = 78 }
  0x4e   :  { %219 = vsyncpa [#allocation3], 1 }
  0x4f   :  { %221 = vsyncpa [#allocation3 + $0x1], 1 }
  0x50   :  { %222 = vsyncpa [#allocation6], 1 }
  0x51   :  { %224 = vsyncpa [#allocation6 + $0x1], 1 }
  0x52   :  { %225 = vsyncpa [#allocation4], 1 }
  0x53   :  { %227 = vsyncpa [#allocation4 + $0x1], 1 }

</bundles_post_ra>
